<compile_context>
chip_gen: v6e
topology: v6e:2x2x1
jax: 0.10.0
libtpu: 0.0.40
codegen_flags: <defaults>
</compile_context>

<pallas_src>
import jax
import jax.numpy as jnp
from jax import lax
from jax.experimental import pallas as pl
from jax.experimental.pallas import tpu as pltpu


def _make_cnn_block_kernel(W, KH, KW, M, Hc, Wc, relu, max_pooling, pk, Hp, Wp):
    """Kernel for one image: conv (im2col + single MXU dot) + bias + ReLU +
    max-pool(kernel=pk, stride=2), fully fused in VMEM."""

    def kernel(x_ref, w_ref, b_ref, o_ref, conv_ref):
        # x_ref   : (1, H*W, Cin) bf16  -- NHWC image, spatial dims flattened.
        # w_ref   : (KH*KW*Cin, Cout) bf16 -- im2col-ordered weights.
        # b_ref   : (1, Cout) f32
        # o_ref   : (1, out_h, out_w, Cout) f32
        # conv_ref: (M, Cout) f32 scratch; M = (Hc-1)*W + Wc. Rows whose column
        #           index >= Wc are "wrap" garbage and are never read.
        x2d = x_ref[0]                                    # (H*W, Cin)

        # ---- im2col: concat the KH*KW shifted views along the lane axis ----
        pieces = []
        for kh in range(KH):
            for kw in range(KW):
                off = kh * W + kw
                pieces.append(x2d[off:off + M, :])        # (M, Cin) static slice
        patches = jnp.concatenate(pieces, axis=-1)        # (M, KH*KW*Cin) bf16

        # ---- conv as ONE MXU matmul (f32 accumulation); bias + ReLU fused ----
        acc = jnp.dot(patches, w_ref[...],
                      preferred_element_type=jnp.float32)  # (M, Cout) f32
        acc = acc + b_ref[...]                             # (1, Cout) broadcast
        if relu:
            acc = jnp.maximum(acc, 0.0)
        conv_ref[...] = acc                                # one dense slab store

        # ---- max pool: kernel=pk, stride=2 (as in the PyTorch forward) ------
        if max_pooling:
            for ph in range(Hp):                           # static, unrolled
                base = 2 * ph * W
                m = None
                for dh in range(pk):
                    for dw in range(pk):
                        v = conv_ref[pl.ds(base + dh * W + dw, Wp, stride=2), :]
                        m = v if m is None else jnp.maximum(m, v)
                o_ref[0, ph] = m.astype(o_ref.dtype)
        else:
            for h in range(Hc):
                o_ref[0, h] = conv_ref[pl.ds(h * W, Wc), :].astype(o_ref.dtype)

    return kernel


def cnn_block_forward(x, conv_w, conv_b, *, stride=1, padding=0,
                      relu=True, max_pooling=True, pooling_kernel=2):
    """CNNBlock forward (batchnorm=False path).
    x: (N, Cin, H, W) NCHW; conv_w: (Cout, Cin, KH, KW); conv_b: (Cout,).
    Returns NCHW f32."""
    # TODO(synk): BatchNorm2d with batch statistics not implemented (module default batchnorm=False).
    if stride != 1:
        # TODO(synk): conv stride != 1 not implemented (module default stride=1).
        raise NotImplementedError("conv stride != 1 not supported")

    N, Cin, H, W = x.shape
    Cout, Cin_w, KH, KW = conv_w.shape
    assert Cin_w == Cin
    if padding:
        x = jnp.pad(x, ((0, 0), (0, 0), (padding, padding), (padding, padding)))
        H += 2 * padding
        W += 2 * padding
    Hc, Wc = H - KH + 1, W - KW + 1
    assert Hc >= 1 and Wc >= 1, "conv output would be empty"
    K = KH * KW * Cin
    M = (Hc - 1) * W + Wc            # flattened conv-map length (incl. wrap cols)

    # NCHW -> channels-last, flattened spatial; bf16 operands for the MXU
    # (halves the x HBM traffic fed to the kernel as well).
    # TODO(synk): accept NHWC at the model boundary to drop this HBM transpose.
    x2d = jnp.transpose(x, (0, 2, 3, 1)).reshape(N, H * W, Cin).astype(jnp.bfloat16)
    w2d = jnp.transpose(conv_w, (2, 3, 1, 0)).reshape(K, Cout).astype(jnp.bfloat16)
    b_row = conv_b.reshape(1, Cout).astype(jnp.float32)

    if max_pooling:
        pk = int(pooling_kernel)
        assert pk >= 1 and Hc >= pk and Wc >= pk, "pool window larger than conv map"
        # PyTorch forward uses F.max_pool2d(x, kernel_size=pk, stride=2).
        Hp = (Hc - pk) // 2 + 1
        Wp = (Wc - pk) // 2 + 1
        out_h, out_w = Hp, Wp
    else:
        pk, Hp, Wp = 0, 0, 0
        out_h, out_w = Hc, Wc

    kernel = _make_cnn_block_kernel(W, KH, KW, M, Hc, Wc, relu, max_pooling,
                                    pk, Hp, Wp)

    flops = 2 * N * M * K * Cout
    bytes_accessed = (2 * N * H * W * Cin + 2 * K * Cout + 4 * Cout
                      + 4 * N * out_h * out_w * Cout)

    # TODO(synk): for large H (v7x: 64 MiB VMEM) add a second "parallel" grid
    # axis over output-row tiles with (KH-1)-row halos instead of whole images.
    out_nhwc = pl.pallas_call(
        kernel,
        out_shape=jax.ShapeDtypeStruct((N, out_h, out_w, Cout), jnp.float32),
        grid=(N,),
        in_specs=[
            pl.BlockSpec((1, H * W, Cin), lambda n: (n, 0, 0)),
            pl.BlockSpec((K, Cout), lambda n: (0, 0)),
            pl.BlockSpec((1, Cout), lambda n: (0, 0)),
        ],
        out_specs=pl.BlockSpec((1, out_h, out_w, Cout), lambda n: (n, 0, 0, 0)),
        scratch_shapes=[pltpu.VMEM((M, Cout), jnp.float32)],
        compiler_params=pltpu.CompilerParams(
            dimension_semantics=("parallel",),
            vmem_limit_bytes=48 * 1024 * 1024,   # <= v7x 64 MiB; ample on v5e/v6e
        ),
        cost_estimate=pl.CostEstimate(flops=int(flops), transcendentals=0,
                                      bytes_accessed=int(bytes_accessed)),
    )(x2d, w2d, b_row)
    return jnp.transpose(out_nhwc, (0, 3, 1, 2))  # back to NCHW


if __name__ == "__main__":
    key = jax.random.PRNGKey(0)
    kx, kw, kb = jax.random.split(key, 3)

    # Small shapes consistent with the module: batch=2, channels=4, spatial=16.
    N, Cin, H, W = 2, 4, 16, 16
    Cout, KH, KW = 8, 3, 3
    pooling_kernel = 2

    def _bf16_exact(a):
        # bf16-representable values: the kernel intentionally feeds bf16
        # operands to the MXU (f32 accumulation), so this keeps the check
        # insensitive to operand-precision rounding.
        return a.astype(jnp.bfloat16).astype(jnp.float32)

    x = _bf16_exact(jax.random.normal(kx, (N, Cin, H, W), dtype=jnp.float32))

    # nn.Conv2d-style init: uniform(-1/sqrt(fan_in), 1/sqrt(fan_in))
    fan_in = Cin * KH * KW
    bound = 1.0 / (fan_in ** 0.5)
    conv_w = _bf16_exact(jax.random.uniform(kw, (Cout, Cin, KH, KW),
                                            minval=-bound, maxval=bound,
                                            dtype=jnp.float32))
    conv_b = _bf16_exact(jax.random.uniform(kb, (Cout,),
                                            minval=-bound, maxval=bound,
                                            dtype=jnp.float32))

    y = cnn_block_forward(x, conv_w, conv_b, relu=True, max_pooling=True,
                          pooling_kernel=pooling_kernel)
    y = jax.block_until_ready(y)

    # pure-JAX reference: conv -> bias -> relu -> maxpool(k=2, stride=2)
    y_ref = lax.conv_general_dilated(
        x, conv_w, window_strides=(1, 1), padding="VALID",
        dimension_numbers=("NCHW", "OIHW", "NCHW"),
        precision=lax.Precision.HIGHEST)
    y_ref = y_ref + conv_b[None, :, None, None]
    y_ref = jnp.maximum(y_ref, 0.0)
    y_ref = lax.reduce_window(
        y_ref, jnp.array(-jnp.inf, dtype=y_ref.dtype), lax.max,
        window_dimensions=(1, 1, pooling_kernel, pooling_kernel),
        window_strides=(1, 1, 2, 2), padding="VALID")

    Hp = (H - KH + 1 - pooling_kernel) // 2 + 1
    Wp = (W - KW + 1 - pooling_kernel) // 2 + 1
    assert y.shape == (N, Cout, Hp, Wp), y.shape
    assert jnp.allclose(y, y_ref, atol=1e-4, rtol=1e-4), \
        float(jnp.max(jnp.abs(y - y_ref)))
    print("KERNEL_OK")
</pallas_src>

<mosaic_0001>
module attributes {stable_mosaic.version = 11 : i64} {
  func.func @kernel(%arg0: i32, %arg1: memref<1x256x4xbf16, #tpu.memory_space<vmem>>, %arg2: memref<36x8xbf16, #tpu.memory_space<vmem>>, %arg3: memref<1x8xf32, #tpu.memory_space<vmem>>, %arg4: memref<1x7x7x8xf32, #tpu.memory_space<vmem>>, %arg5: memref<222x8xf32, #tpu.memory_space<vmem>>) attributes {dimension_semantics = [#tpu.dimension_semantics<parallel>], iteration_bounds = array<i64: 2>, scalar_prefetch = 0 : i64, scratch_operands = 1 : i64, tpu.core_type = #tpu.core_type<tc>, window_params = [{transform_indices = @transform_0, window_bounds = array<i64: 1, 256, 4>}, {pipeline_mode = #tpu.pipeline_mode<synchronous>, transform_indices = @transform_1, window_bounds = array<i64: 36, 8>}, {pipeline_mode = #tpu.pipeline_mode<synchronous>, transform_indices = @transform_2, window_bounds = array<i64: 1, 8>}, {transform_indices = @transform_3, window_bounds = array<i64: 1, 7, 7, 8>}]} {
    %c0 = arith.constant 0 : index
    %c0_0 = arith.constant 0 : index
    %c0_1 = arith.constant 0 : index
    %0 = vector.load %arg1[%c0, %c0_0, %c0_1] : memref<1x256x4xbf16, #tpu.memory_space<vmem>>, vector<1x256x4xbf16>
    %1 = vector.shape_cast %0 : vector<1x256x4xbf16> to vector<256x4xbf16>
    %2 = vector.extract_strided_slice %1 {offsets = [0, 0], sizes = [222, 4], strides = [1, 1]} : vector<256x4xbf16> to vector<222x4xbf16>
    %3 = vector.extract_strided_slice %1 {offsets = [1, 0], sizes = [222, 4], strides = [1, 1]} : vector<256x4xbf16> to vector<222x4xbf16>
    %4 = vector.extract_strided_slice %1 {offsets = [2, 0], sizes = [222, 4], strides = [1, 1]} : vector<256x4xbf16> to vector<222x4xbf16>
    %5 = vector.extract_strided_slice %1 {offsets = [16, 0], sizes = [222, 4], strides = [1, 1]} : vector<256x4xbf16> to vector<222x4xbf16>
    %6 = vector.extract_strided_slice %1 {offsets = [17, 0], sizes = [222, 4], strides = [1, 1]} : vector<256x4xbf16> to vector<222x4xbf16>
    %7 = vector.extract_strided_slice %1 {offsets = [18, 0], sizes = [222, 4], strides = [1, 1]} : vector<256x4xbf16> to vector<222x4xbf16>
    %8 = vector.extract_strided_slice %1 {offsets = [32, 0], sizes = [222, 4], strides = [1, 1]} : vector<256x4xbf16> to vector<222x4xbf16>
    %9 = vector.extract_strided_slice %1 {offsets = [33, 0], sizes = [222, 4], strides = [1, 1]} : vector<256x4xbf16> to vector<222x4xbf16>
    %10 = vector.extract_strided_slice %1 {offsets = [34, 0], sizes = [222, 4], strides = [1, 1]} : vector<256x4xbf16> to vector<222x4xbf16>
    %11 = tpu.concatenate %2, %3, %4, %5, %6, %7, %8, %9, %10 in 1 : vector<222x4xbf16>, vector<222x4xbf16>, vector<222x4xbf16>, vector<222x4xbf16>, vector<222x4xbf16>, vector<222x4xbf16>, vector<222x4xbf16>, vector<222x4xbf16>, vector<222x4xbf16> -> vector<222x36xbf16>
    %c0_2 = arith.constant 0 : index
    %c0_3 = arith.constant 0 : index
    %12 = vector.load %arg2[%c0_2, %c0_3] : memref<36x8xbf16, #tpu.memory_space<vmem>>, vector<36x8xbf16>
    %cst = arith.constant dense<0.000000e+00> : vector<222x8xf32>
    %13 = tpu.matmul %11, %12, %cst {dimension_numbers = #tpu.dot_dimension_numbers<[1], [0], [0], [1], [0, 0, 1, 1], [], []>} : vector<222x36xbf16>, vector<36x8xbf16>, vector<222x8xf32> -> vector<222x8xf32>
    %c0_4 = arith.constant 0 : index
    %c0_5 = arith.constant 0 : index
    %14 = vector.load %arg3[%c0_4, %c0_5] : memref<1x8xf32, #tpu.memory_space<vmem>>, vector<1x8xf32>
    %15 = vector.broadcast %14 : vector<1x8xf32> to vector<222x8xf32>
    %16 = arith.addf %13, %15 : vector<222x8xf32>
    %cst_6 = arith.constant 0.000000e+00 : f32
    %17 = vector.broadcast %cst_6 : f32 to vector<222x8xf32>
    %18 = arith.maximumf %16, %17 : vector<222x8xf32>
    %c0_7 = arith.constant 0 : index
    %c0_8 = arith.constant 0 : index
    %19 = vector.load %arg5[%c0_7, %c0_8] : memref<222x8xf32, #tpu.memory_space<vmem>>, vector<222x8xf32>
    tpu.vector_store %arg5[%c0_7, %c0_8], %18 {strides = array<i32>} : memref<222x8xf32, #tpu.memory_space<vmem>>, vector<222x8xf32>,
    %c0_9 = arith.constant 0 : index
    %c0_10 = arith.constant 0 : index
    %20 = tpu.strided_load %arg5[%c0_9, %c0_10] {strides = array<i32: 2, 1>} : memref<222x8xf32, #tpu.memory_space<vmem>>, vector<7x8xf32>
    %c1 = arith.constant 1 : index
    %c0_11 = arith.constant 0 : index
    %21 = tpu.strided_load %arg5[%c1, %c0_11] {strides = array<i32: 2, 1>} : memref<222x8xf32, #tpu.memory_space<vmem>>, vector<7x8xf32>
    %22 = arith.maximumf %20, %21 : vector<7x8xf32>
    %c16 = arith.constant 16 : index
    %c0_12 = arith.constant 0 : index
    %23 = tpu.strided_load %arg5[%c16, %c0_12] {strides = array<i32: 2, 1>} : memref<222x8xf32, #tpu.memory_space<vmem>>, vector<7x8xf32>
    %24 = arith.maximumf %22, %23 : vector<7x8xf32>
    %c17 = arith.constant 17 : index
    %c0_13 = arith.constant 0 : index
    %25 = tpu.strided_load %arg5[%c17, %c0_13] {strides = array<i32: 2, 1>} : memref<222x8xf32, #tpu.memory_space<vmem>>, vector<7x8xf32>
    %26 = arith.maximumf %24, %25 : vector<7x8xf32>
    %c0_14 = arith.constant 0 : index
    %c0_15 = arith.constant 0 : index
    %c0_16 = arith.constant 0 : index
    %c0_17 = arith.constant 0 : index
    %27 = vector.load %arg4[%c0_14, %c0_15, %c0_16, %c0_17] : memref<1x7x7x8xf32, #tpu.memory_space<vmem>>, vector<1x1x7x8xf32>
    %28 = vector.shape_cast %27 : vector<1x1x7x8xf32> to vector<7x8xf32>
    %29 = vector.shape_cast %26 : vector<7x8xf32> to vector<1x1x7x8xf32>
    tpu.vector_store %arg4[%c0_14, %c0_15, %c0_16, %c0_17], %29 {strides = array<i32>} : memref<1x7x7x8xf32, #tpu.memory_space<vmem>>, vector<1x1x7x8xf32>,
    %c32 = arith.constant 32 : index
    %c0_18 = arith.constant 0 : index
    %30 = tpu.strided_load %arg5[%c32, %c0_18] {strides = array<i32: 2, 1>} : memref<222x8xf32, #tpu.memory_space<vmem>>, vector<7x8xf32>
    %c33 = arith.constant 33 : index
    %c0_19 = arith.constant 0 : index
    %31 = tpu.strided_load %arg5[%c33, %c0_19] {strides = array<i32: 2, 1>} : memref<222x8xf32, #tpu.memory_space<vmem>>, vector<7x8xf32>
    %32 = arith.maximumf %30, %31 : vector<7x8xf32>
    %c48 = arith.constant 48 : index
    %c0_20 = arith.constant 0 : index
    %33 = tpu.strided_load %arg5[%c48, %c0_20] {strides = array<i32: 2, 1>} : memref<222x8xf32, #tpu.memory_space<vmem>>, vector<7x8xf32>
    %34 = arith.maximumf %32, %33 : vector<7x8xf32>
    %c49 = arith.constant 49 : index
    %c0_21 = arith.constant 0 : index
    %35 = tpu.strided_load %arg5[%c49, %c0_21] {strides = array<i32: 2, 1>} : memref<222x8xf32, #tpu.memory_space<vmem>>, vector<7x8xf32>
    %36 = arith.maximumf %34, %35 : vector<7x8xf32>
    %c0_22 = arith.constant 0 : index
    %c1_23 = arith.constant 1 : index
    %c0_24 = arith.constant 0 : index
    %c0_25 = arith.constant 0 : index
    %37 = vector.load %arg4[%c0_22, %c1_23, %c0_24, %c0_25] : memref<1x7x7x8xf32, #tpu.memory_space<vmem>>, vector<1x1x7x8xf32>
    %38 = vector.shape_cast %37 : vector<1x1x7x8xf32> to vector<7x8xf32>
    %39 = vector.shape_cast %36 : vector<7x8xf32> to vector<1x1x7x8xf32>
    tpu.vector_store %arg4[%c0_22, %c1_23, %c0_24, %c0_25], %39 {strides = array<i32>} : memref<1x7x7x8xf32, #tpu.memory_space<vmem>>, vector<1x1x7x8xf32>,
    %c64 = arith.constant 64 : index
    %c0_26 = arith.constant 0 : index
    %40 = tpu.strided_load %arg5[%c64, %c0_26] {strides = array<i32: 2, 1>} : memref<222x8xf32, #tpu.memory_space<vmem>>, vector<7x8xf32>
    %c65 = arith.constant 65 : index
    %c0_27 = arith.constant 0 : index
    %41 = tpu.strided_load %arg5[%c65, %c0_27] {strides = array<i32: 2, 1>} : memref<222x8xf32, #tpu.memory_space<vmem>>, vector<7x8xf32>
    %42 = arith.maximumf %40, %41 : vector<7x8xf32>
    %c80 = arith.constant 80 : index
    %c0_28 = arith.constant 0 : index
    %43 = tpu.strided_load %arg5[%c80, %c0_28] {strides = array<i32: 2, 1>} : memref<222x8xf32, #tpu.memory_space<vmem>>, vector<7x8xf32>
    %44 = arith.maximumf %42, %43 : vector<7x8xf32>
    %c81 = arith.constant 81 : index
    %c0_29 = arith.constant 0 : index
    %45 = tpu.strided_load %arg5[%c81, %c0_29] {strides = array<i32: 2, 1>} : memref<222x8xf32, #tpu.memory_space<vmem>>, vector<7x8xf32>
    %46 = arith.maximumf %44, %45 : vector<7x8xf32>
    %c0_30 = arith.constant 0 : index
    %c2 = arith.constant 2 : index
    %c0_31 = arith.constant 0 : index
    %c0_32 = arith.constant 0 : index
    %47 = vector.load %arg4[%c0_30, %c2, %c0_31, %c0_32] : memref<1x7x7x8xf32, #tpu.memory_space<vmem>>, vector<1x1x7x8xf32>
    %48 = vector.shape_cast %47 : vector<1x1x7x8xf32> to vector<7x8xf32>
    %49 = vector.shape_cast %46 : vector<7x8xf32> to vector<1x1x7x8xf32>
    tpu.vector_store %arg4[%c0_30, %c2, %c0_31, %c0_32], %49 {strides = array<i32>} : memref<1x7x7x8xf32, #tpu.memory_space<vmem>>, vector<1x1x7x8xf32>,
    %c96 = arith.constant 96 : index
    %c0_33 = arith.constant 0 : index
    %50 = tpu.strided_load %arg5[%c96, %c0_33] {strides = array<i32: 2, 1>} : memref<222x8xf32, #tpu.memory_space<vmem>>, vector<7x8xf32>
    %c97 = arith.constant 97 : index
    %c0_34 = arith.constant 0 : index
    %51 = tpu.strided_load %arg5[%c97, %c0_34] {strides = array<i32: 2, 1>} : memref<222x8xf32, #tpu.memory_space<vmem>>, vector<7x8xf32>
    %52 = arith.maximumf %50, %51 : vector<7x8xf32>
    %c112 = arith.constant 112 : index
    %c0_35 = arith.constant 0 : index
    %53 = tpu.strided_load %arg5[%c112, %c0_35] {strides = array<i32: 2, 1>} : memref<222x8xf32, #tpu.memory_space<vmem>>, vector<7x8xf32>
    %54 = arith.maximumf %52, %53 : vector<7x8xf32>
    %c113 = arith.constant 113 : index
    %c0_36 = arith.constant 0 : index
    %55 = tpu.strided_load %arg5[%c113, %c0_36] {strides = array<i32: 2, 1>} : memref<222x8xf32, #tpu.memory_space<vmem>>, vector<7x8xf32>
    %56 = arith.maximumf %54, %55 : vector<7x8xf32>
    %c0_37 = arith.constant 0 : index
    %c3 = arith.constant 3 : index
    %c0_38 = arith.constant 0 : index
    %c0_39 = arith.constant 0 : index
    %57 = vector.load %arg4[%c0_37, %c3, %c0_38, %c0_39] : memref<1x7x7x8xf32, #tpu.memory_space<vmem>>, vector<1x1x7x8xf32>
    %58 = vector.shape_cast %57 : vector<1x1x7x8xf32> to vector<7x8xf32>
    %59 = vector.shape_cast %56 : vector<7x8xf32> to vector<1x1x7x8xf32>
    tpu.vector_store %arg4[%c0_37, %c3, %c0_38, %c0_39], %59 {strides = array<i32>} : memref<1x7x7x8xf32, #tpu.memory_space<vmem>>, vector<1x1x7x8xf32>,
    %c128 = arith.constant 128 : index
    %c0_40 = arith.constant 0 : index
    %60 = tpu.strided_load %arg5[%c128, %c0_40] {strides = array<i32: 2, 1>} : memref<222x8xf32, #tpu.memory_space<vmem>>, vector<7x8xf32>
    %c129 = arith.constant 129 : index
    %c0_41 = arith.constant 0 : index
    %61 = tpu.strided_load %arg5[%c129, %c0_41] {strides = array<i32: 2, 1>} : memref<222x8xf32, #tpu.memory_space<vmem>>, vector<7x8xf32>
    %62 = arith.maximumf %60, %61 : vector<7x8xf32>
    %c144 = arith.constant 144 : index
    %c0_42 = arith.constant 0 : index
    %63 = tpu.strided_load %arg5[%c144, %c0_42] {strides = array<i32: 2, 1>} : memref<222x8xf32, #tpu.memory_space<vmem>>, vector<7x8xf32>
    %64 = arith.maximumf %62, %63 : vector<7x8xf32>
    %c145 = arith.constant 145 : index
    %c0_43 = arith.constant 0 : index
    %65 = tpu.strided_load %arg5[%c145, %c0_43] {strides = array<i32: 2, 1>} : memref<222x8xf32, #tpu.memory_space<vmem>>, vector<7x8xf32>
    %66 = arith.maximumf %64, %65 : vector<7x8xf32>
    %c0_44 = arith.constant 0 : index
    %c4 = arith.constant 4 : index
    %c0_45 = arith.constant 0 : index
    %c0_46 = arith.constant 0 : index
    %67 = vector.load %arg4[%c0_44, %c4, %c0_45, %c0_46] : memref<1x7x7x8xf32, #tpu.memory_space<vmem>>, vector<1x1x7x8xf32>
    %68 = vector.shape_cast %67 : vector<1x1x7x8xf32> to vector<7x8xf32>
    %69 = vector.shape_cast %66 : vector<7x8xf32> to vector<1x1x7x8xf32>
    tpu.vector_store %arg4[%c0_44, %c4, %c0_45, %c0_46], %69 {strides = array<i32>} : memref<1x7x7x8xf32, #tpu.memory_space<vmem>>, vector<1x1x7x8xf32>,
    %c160 = arith.constant 160 : index
    %c0_47 = arith.constant 0 : index
    %70 = tpu.strided_load %arg5[%c160, %c0_47] {strides = array<i32: 2, 1>} : memref<222x8xf32, #tpu.memory_space<vmem>>, vector<7x8xf32>
    %c161 = arith.constant 161 : index
    %c0_48 = arith.constant 0 : index
    %71 = tpu.strided_load %arg5[%c161, %c0_48] {strides = array<i32: 2, 1>} : memref<222x8xf32, #tpu.memory_space<vmem>>, vector<7x8xf32>
    %72 = arith.maximumf %70, %71 : vector<7x8xf32>
    %c176 = arith.constant 176 : index
    %c0_49 = arith.constant 0 : index
    %73 = tpu.strided_load %arg5[%c176, %c0_49] {strides = array<i32: 2, 1>} : memref<222x8xf32, #tpu.memory_space<vmem>>, vector<7x8xf32>
    %74 = arith.maximumf %72, %73 : vector<7x8xf32>
    %c177 = arith.constant 177 : index
    %c0_50 = arith.constant 0 : index
    %75 = tpu.strided_load %arg5[%c177, %c0_50] {strides = array<i32: 2, 1>} : memref<222x8xf32, #tpu.memory_space<vmem>>, vector<7x8xf32>
    %76 = arith.maximumf %74, %75 : vector<7x8xf32>
    %c0_51 = arith.constant 0 : index
    %c5 = arith.constant 5 : index
    %c0_52 = arith.constant 0 : index
    %c0_53 = arith.constant 0 : index
    %77 = vector.load %arg4[%c0_51, %c5, %c0_52, %c0_53] : memref<1x7x7x8xf32, #tpu.memory_space<vmem>>, vector<1x1x7x8xf32>
    %78 = vector.shape_cast %77 : vector<1x1x7x8xf32> to vector<7x8xf32>
    %79 = vector.shape_cast %76 : vector<7x8xf32> to vector<1x1x7x8xf32>
    tpu.vector_store %arg4[%c0_51, %c5, %c0_52, %c0_53], %79 {strides = array<i32>} : memref<1x7x7x8xf32, #tpu.memory_space<vmem>>, vector<1x1x7x8xf32>,
    %c192 = arith.constant 192 : index
    %c0_54 = arith.constant 0 : index
    %80 = tpu.strided_load %arg5[%c192, %c0_54] {strides = array<i32: 2, 1>} : memref<222x8xf32, #tpu.memory_space<vmem>>, vector<7x8xf32>
    %c193 = arith.constant 193 : index
    %c0_55 = arith.constant 0 : index
    %81 = tpu.strided_load %arg5[%c193, %c0_55] {strides = array<i32: 2, 1>} : memref<222x8xf32, #tpu.memory_space<vmem>>, vector<7x8xf32>
    %82 = arith.maximumf %80, %81 : vector<7x8xf32>
    %c208 = arith.constant 208 : index
    %c0_56 = arith.constant 0 : index
    %83 = tpu.strided_load %arg5[%c208, %c0_56] {strides = array<i32: 2, 1>} : memref<222x8xf32, #tpu.memory_space<vmem>>, vector<7x8xf32>
    %84 = arith.maximumf %82, %83 : vector<7x8xf32>
    %c209 = arith.constant 209 : index
    %c0_57 = arith.constant 0 : index
    %85 = tpu.strided_load %arg5[%c209, %c0_57] {strides = array<i32: 2, 1>} : memref<222x8xf32, #tpu.memory_space<vmem>>, vector<7x8xf32>
    %86 = arith.maximumf %84, %85 : vector<7x8xf32>
    %c0_58 = arith.constant 0 : index
    %c6 = arith.constant 6 : index
    %c0_59 = arith.constant 0 : index
    %c0_60 = arith.constant 0 : index
    %87 = vector.load %arg4[%c0_58, %c6, %c0_59, %c0_60] : memref<1x7x7x8xf32, #tpu.memory_space<vmem>>, vector<1x1x7x8xf32>
    %88 = vector.shape_cast %87 : vector<1x1x7x8xf32> to vector<7x8xf32>
    %89 = vector.shape_cast %86 : vector<7x8xf32> to vector<1x1x7x8xf32>
    tpu.vector_store %arg4[%c0_58, %c6, %c0_59, %c0_60], %89 {strides = array<i32>} : memref<1x7x7x8xf32, #tpu.memory_space<vmem>>, vector<1x1x7x8xf32>,
    return
  }
  func.func @transform_0(%arg0: i32) -> (i32, i32, i32) {
    %c0_i32 = arith.constant 0 : i32
    %c0_i32_0 = arith.constant 0 : i32
    %c0_i32_1 = arith.constant 0 : i32
    return %arg0, %c0_i32, %c0_i32_0 : i32, i32, i32
  }
  func.func @transform_1(%arg0: i32) -> (i32, i32) {
    %c0_i32 = arith.constant 0 : i32
    %c0_i32_0 = arith.constant 0 : i32
    %c0_i32_1 = arith.constant 0 : i32
    return %c0_i32, %c0_i32_0 : i32, i32
  }
  func.func @transform_2(%arg0: i32) -> (i32, i32) {
    %c0_i32 = arith.constant 0 : i32
    %c0_i32_0 = arith.constant 0 : i32
    %c0_i32_1 = arith.constant 0 : i32
    return %c0_i32, %c0_i32_0 : i32, i32
  }
  func.func @transform_3(%arg0: i32) -> (i32, i32, i32, i32) {
    %c0_i32 = arith.constant 0 : i32
    %c0_i32_0 = arith.constant 0 : i32
    %c0_i32_1 = arith.constant 0 : i32
    %c0_i32_2 = arith.constant 0 : i32
    return %arg0, %c0_i32, %c0_i32_0, %c0_i32_1 : i32, i32, i32, i32
  }
}

</mosaic_0001>

<bundles_post_ra>
// kernel: tpu_custom_call.1
= control target key start
LH: loop header
LB: loop body
LE: loop exit
PB: predicated region body
PF: predicated region fallthrough
CT: control target
= control target key end

     0   :  { %s1489_s12 = smov 0   ;;  %s2110_s0 = inlined_call_operand.vmem [shape: bf16[2,256,4], index: 0, kind: input, shape index: {}]   ;;  %s2111_s1 = inlined_call_operand.vmem [shape: bf16[36,8], index: 1, kind: input, shape index: {}]   ;;  %s2112_s2 = inlined_call_operand.vmem [shape: f32[1,8], index: 2, kind: input, shape index: {}]   ;;  %s2113_s3 = inlined_call_operand.vmem [shape: f32[2,7,7,8], index: 3, kind: output, shape index: {}]  }
   0x1 LB: > { %s1307_s13 = sadd.s32 4294967295, %s1459_s12   ;;  %p1311_p0 = scmp.ge.s32.totalorder %s1459_s12, 1  ;;  %s1459_s12 = sphi %s1489_s12, %s13_s12  }
   0x2   : > { %p137_p1 = scmp.lt.s32.totalorder %s1459_s12, 3 }
   0x4   : > { %p138_p2 = pnand %p1311_p0, %p137_p1 }
   0x5   : > { %p161_p3 = scmp.lt.s32.totalorder (!%p138_p2), %s1307_s13, 1  ;;  %s1461_s18 = smov (!%p138_p2), 12  }
   0x6   : > { %141 = sbr.rel (%p138_p2) target bundleno = 570 (0x23a), region = 32  ;;  %s1462_s19 = smov (!%p138_p2), 20  }
   0x7   : > { %s1463_s20 = smov (!%p138_p2), 8   ;;  %s1464_s21 = smov (!%p138_p2), 4  }
   0x8   : > { %s1465_s22 = smov (!%p138_p2), 16   ;;  %s1466_s25 = smov (!%p138_p2), 24  }
   0x9   : > { %s1467_s28 = smov (!%p138_p2), 28   ;;  %s1468_s4 = smov (!%p138_p2), 32  }
   0xb   : > { %s2115_s13 = smov (!%p161_p3, %s1307_s13), 1  ;;  %vm414_vm0 = vcmask 1046528   ;;  %vm274_vm1 = vsmask.f32 7424  ;;  %vm956_vm2 = vcmask 1041408   ;;  %v1449_v42 = vld [vmem:[%s2111_s1 + $0x8] sm:$0xff]  }
   0xc   : > { %s1357_s14 = sshll.u32 %s2115_s13, 7  ;;  %v1448_v36 = vld [vmem:[%s2111_s1 + $0x10] ss:$0 sps:$4 sm:$0x33]   ;;  %v1450_v49 = vld [vmem:[%s2111_s1] sm:$0xff]   ;;  %vm668_vm3 = vcmask 31744  }
   0xd   : > { %s1503_s17 = scalar_lea.vmem %s2110_s0, %s1357_s14  ;;  %1415 = vmatprep.subr.msk.bf16.mxu0 %vm956_vm2, %v1448_v36  ;;  %v958_v43 = vsel %vm956_vm2, %v1448_v36, 0  ;;  %1416 = vmatprep.subr.msk.bf16.mxu1 %vm956_vm2, %v1448_v36  ;;  %vm697_vm4 = vcmask 64512   ;;  %vm726_vm5 = vcmask 97280   ;;  %vm755_vm6 = vcmask 130048   ;;  %s1417_s7 = smul.u32 56, %s2115_s13 }
   0xe   : > { %v1506_v0 = vld [vmem:[%s1503_s17 + $0x10] sm:$0xff]   ;;  %v1509_v1 = vld [vmem:[%s1503_s17 + $0x8] sm:$0xff]   ;;  %v1515_v3 = vld [vmem:[%s1503_s17] sm:$0xff]   ;;  %1376 = vmatpush3.bf16.msra.mxu0 %v958_v43  ;;  %1412 = vmatpush3.bf16.msra.mxu1 %v958_v43  ;;  %vm784_vm7 = vcmask 162816   ;;  %vm813_vm8 = vcmask 195584   ;;  %vm842_vm9 = vcmask 228352  }
   0xf   : > { %477 = vrot.lane.b32.xlu1 %v1506_v0, %s1461_s18  ;;  %v418_v2 = vrot.slane %v1506_v0, 1  ;;  %475 = vrot.lane.b32.xlu0 %v1509_v1, %s1461_s18  ;;  %v416_v4 = vrot.slane %v1509_v1, 1  ;;  %v283_v5 = vshll.u32 %v1509_v1, 16  ;;  %v415_v6 = vrot.slane %v1515_v3, 1  ;;  %v1525_v9 = vld [vmem:[%s1503_s17 + $0x18] sm:$0xff]   ;;  %v1544_v27 = vld [vmem:[%s1503_s17 + $0x20] sm:$0xff]   ;;  %s2044_s10 = scalar_lea.vmem %s2113_s3, %s1417_s7 }
  0x10   : > { %v276_v7 = vshrl.u32 %v1515_v3, 16  ;;  %v278_v8 = vshll.u32 %v1515_v3, 16  ;;  %v287_v10 = vshrl.u32 %v1509_v1, 16  ;;  %v291_v12 = vshll.u32 %v1506_v0, 16  ;;  %v1547_v28 = vld [vmem:[%s1503_s17 + $0x40] sm:$0xff]   ;;  %v1560_v34 = vld [vmem:[%s1503_s17 + $0x48] sm:$0xff]   ;;  %1377 = vmatprep.subr.bf16.mxu0 %v1449_v42  ;;  %1410 = vmatprep.subr.bf16.mxu1 %v1449_v42 }
  0x11   : > { %v419_v11 = vsel %vm414_vm0, %v416_v4, %v418_v2  ;;  %v417_v13 = vsel %vm414_vm0, %v415_v6, %v416_v4  ;;  %v285_v15 = vrot.slane %v283_v5, 1  ;;  %v420_v16 = vrot.slane %v1525_v9, 1  ;;  %v1579_v41 = vld [vmem:[%s1503_s17 + $0x50] sm:$0xff]   ;;  %v1632_v60 = vld [vmem:[%s1503_s17 + $0x58] sm:$0xff]   ;;  %v1635_v61 = vld [vmem:[%s1503_s17 + $0x28] sm:$0xff]  }
  0x12   : > { %v280_v14 = vrot.slane %v278_v8, 1  ;;  %v295_v17 = vshrl.u32 %v1506_v0, 16  ;;  %v293_v20 = vrot.slane %v291_v12, 1  ;;  %v299_v21 = vshll.u32 %v1525_v9, 16  ;;  %1378 = vmatpush3.bf16.msra.mxu0 %v1449_v42  ;;  %1413 = vmatpush3.bf16.msra.mxu1 %v1449_v42  ;;  %v1713_v36 = vld [vmem:[%s1503_s17 + $0x38] sm:$0xff]  }
  0x13   : > { %541 = vrot.lane.b32.xlu0 %v419_v11, %s1462_s19  ;;  %442 = vrot.lane.b32.xlu1 %v417_v13, %s1463_s20  ;;  %v289_v19 = vor.u32 %v287_v10, %v285_v15  ;;  %v1540_v23 = vsel %vm414_vm0, %v418_v2, %v420_v16  ;;  %v303_v30 = vshrl.u32 %v1525_v9, 16  ;;  %v307_v31 = vshll.u32 %v1544_v27, 16 }
  0x14   : > { %v281_v18 = vor.u32 %v280_v14, %v276_v7  ;;  %v297_v25 = vor.u32 %v295_v17, %v293_v20  ;;  %v301_v26 = vrot.slane %v299_v21, 1  ;;  %v339_v35 = vshll.u32 %v1547_v28, 16  ;;  %1379 = vmatprep.subr.bf16.mxu0 %v1450_v49  ;;  %1411 = vmatprep.subr.bf16.mxu1 %v1450_v49  ;;  %v1673_v17 = vld [vmem:[%s1503_s17 + $0x30] sm:$0xff]  }
  0x15   : > { %v294_v24 = vsel %vm274_vm1, %v289_v19, %v293_v20  ;;  %v1557_v33 = vrot.slane %v307_v31, 1  ;;  %v343_v39 = vshrl.u32 %v1547_v28, 16  ;;  %v347_v40 = vshll.u32 %v1560_v34, 16 }
  0x16   : > { %v286_v22 = vsel %vm274_vm1, %v281_v18, %v285_v15  ;;  %v302_v29 = vsel %vm274_vm1, %v297_v25, %v301_v26  ;;  %v305_v32 = vor.u32 %v303_v30, %v301_v26  ;;  %v1574_v38 = vrot.slane %v339_v35, 1  ;;  %1380 = vmatpush3.bf16.msra.mxu0 %v1450_v49  ;;  %1414 = vmatpush3.bf16.msra.mxu1 %v1450_v49  ;;  %v1710_v35 = vld [vmem:[%s1503_s17 + $0x68] sm:$0xff]  }
  0x17   : > { %444 = vrot.lane.b32.xlu1 %v419_v11, %s1463_s20  ;;  %386 = vrot.lane.b32.xlu0 %v286_v22, %s1464_s21  ;;  %v422_v44 = vrot.slane %v1544_v27, 1  ;;  %v349_v46 = vrot.slane %v347_v40, 1  ;;  %v351_v47 = vshrl.u32 %v1560_v34, 16  ;;  %v355_v48 = vshll.u32 %v1579_v41, 16 }
  0x18   : > { %v1572_v37 = vsel %vm274_vm1, %v305_v32, %v1557_v33  ;;  %v345_v45 = vor.u32 %v343_v39, %v1574_v38  ;;  %v430_v55 = vrot.slane %v1547_v28, 1  ;;  %v432_v56 = vrot.slane %v1560_v34, 1 }
  0x19   : > { %v423_v50 = vsel %vm414_vm0, %v420_v16, %v422_v44  ;;  %v353_v52 = vor.u32 %v351_v47, %v349_v46  ;;  %v357_v53 = vrot.slane %v355_v48, 1  ;;  %v434_v58 = vrot.slane %v1579_v41, 1  ;;  %v1670_v16 = vld [vmem:[%s1503_s17 + $0x60] sm:$0xff]  }
  0x1a   : > { %v1601_v51 = vsel %vm274_vm1, %v345_v45, %v349_v46  ;;  %v1618_v57 = vsel %vm414_vm0, %v430_v55, %v432_v56  ;;  %v359_v62 = vshrl.u32 %v1579_v41, 16  ;;  %v363_v63 = vshll.u32 %v1632_v60, 16 }
  0x1b   : > { %543 = vrot.lane.b32.xlu1 %v1540_v23, %s1462_s19  ;;  %388 = vrot.lane.b32.xlu0 %v294_v24, %s1464_s21  ;;  %v1607_v54 = vsel %vm274_vm1, %v353_v52, %v357_v53  ;;  %v1626_v59 = vsel %vm414_vm0, %v432_v56, %v434_v58  ;;  %v311_v2 = vshrl.u32 %v1544_v27, 16  ;;  %v315_v4 = vshll.u32 %v1635_v61, 16 }
  0x1c   : > { %v361_v5 = vor.u32 %v359_v62, %v357_v53  ;;  %v365_v6 = vrot.slane %v363_v63, 1  ;;  %v436_v12 = vrot.slane %v1632_v60, 1  ;;  %v424_v13 = vrot.slane %v1635_v61, 1 }
  0x1d   : > { %v313_v7 = vor.u32 %v311_v2, %v1557_v33  ;;  %v317_v8 = vrot.slane %v315_v4, 1  ;;  %v367_v18 = vshrl.u32 %v1632_v60, 16  ;;  %v371_v19 = vshll.u32 %v1670_v16, 16 }
  0x1e   : > { %v366_v10 = vsel %vm274_vm1, %v361_v5, %v365_v6  ;;  %v437_v14 = vsel %vm414_vm0, %v434_v58, %v436_v12  ;;  %v425_v15 = vsel %vm414_vm0, %v422_v44, %v424_v13  ;;  %v319_v20 = vshrl.u32 %v1635_v61, 16 }
  0x1f   : > { %513 = vrot.lane.b32.xlu1 %v302_v29, %s1465_s22  ;;  %511 = vrot.lane.b32.xlu0 %v294_v24, %s1465_s22  ;;  %v318_v11 = vsel %vm274_vm1, %v313_v7, %v317_v8  ;;  %v323_v21 = vshll.u32 %v1673_v17, 16  ;;  %v369_v22 = vor.u32 %v367_v18, %v365_v6  ;;  %v438_v30 = vrot.slane %v1670_v16, 1 }
  0x20   : > { %v321_v24 = vor.u32 %v319_v20, %v317_v8  ;;  %v426_v31 = vrot.slane %v1673_v17, 1  ;;  %v375_v39 = vshrl.u32 %v1670_v16, 16  ;;  %v379_v40 = vshll.u32 %v1710_v35, 16 }
  0x21   : > { %v325_v25 = vrot.slane %v323_v21, 1  ;;  %v439_v32 = vsel %vm414_vm0, %v436_v12, %v438_v30  ;;  %v327_v42 = vshrl.u32 %v1673_v17, 16  ;;  %v331_v43 = vshll.u32 %v1713_v36, 16 }
  0x22   : > { %v427_v33 = vsel %vm414_vm0, %v424_v13, %v426_v31  ;;  %v381_v46 = vrot.slane %v379_v40, 1  ;;  %v1740_v62 = vrot.slane %v1710_v35, 1  ;;  %v428_v63 = vrot.slane %v1713_v36, 1  ;;  %v1764_v13 = vld [vmem:[%s1503_s17 + $0x70] sm:$0xff]  }
  0x23   : > { %576 = vrot.lane.b32.xlu1 %v1525_v9, %s1466_s25  ;;  %574 = vrot.lane.b32.xlu0 %v1506_v0, %s1466_s25  ;;  %v329_v47 = vor.u32 %v327_v42, %v325_v25  ;;  %v333_v48 = vrot.slane %v331_v43, 1  ;;  %v504_v20 = vshll.u32 %v1764_v13, 16  ;;  %v335_v21 = vshrl.u32 %v1713_v36, 16 }
  0x24   : > { %v1747_v5 = vsel %vm414_vm0, %v438_v30, %v1740_v62  ;;  %v1752_v6 = vsel %vm414_vm0, %v426_v31, %v428_v63  ;;  %vm871_vm10 = vcmask 261120   ;;  %vm927_vm11 = vcmask 293888  }
  0x25   : > { %v1733_v53 = vsel %vm274_vm1, %v329_v47, %v333_v48  ;;  %v506_v31 = vrot.slane %v504_v20, 1  ;;  %vm1172_vm12 = vcmask 63488   ;;  %vm1160_vm13 = vcmask 62464  }
  0x27   : > { %612 = vrot.lane.b32.xlu1 %v1572_v37, %s1467_s28  ;;  %610 = vrot.lane.b32.xlu0 %v302_v29, %s1467_s28 }
  0x2b   : > { %390 = vrot.lane.b32.xlu1 %v302_v29, %s1464_s21  ;;  %640 = vrot.lane.b32.xlu0 %v1540_v23, %s1468_s4  ;;  %v326_v29 = vsel %vm274_vm1, %v321_v24, %v325_v25 }
  0x2f   : > { %642 = vrot.lane.b32.xlu1 %v423_v50, %s1468_s4  ;;  %402 = vrot.lane.b32.xlu0 %v1601_v51, %s1464_s21 }
  0x33   : > { %404 = vrot.lane.b32.xlu1 %v1607_v54, %s1464_s21  ;;  %392 = vrot.lane.b32.xlu0 %v1572_v37, %s1464_s21 }
  0x37   : > { %458 = vrot.lane.b32.xlu1 %v1618_v57, %s1463_s20  ;;  %446 = vrot.lane.b32.xlu0 %v1540_v23, %s1463_s20  ;;  %v373_v23 = vrot.slane %v371_v19, 1 }
  0x39   : > { %v374_v26 = vsel %vm274_vm1, %v369_v22, %v373_v23  ;;  %v377_v45 = vor.u32 %v375_v39, %v373_v23 }
  0x3b   : > { %460 = vrot.lane.b32.xlu1 %v1626_v59, %s1463_s20  ;;  %448 = vrot.lane.b32.xlu0 %v423_v50, %s1463_s20  ;;  %v1730_v52 = vsel %vm274_vm1, %v377_v45, %v381_v46 }
  0x3f   : > { %491 = vrot.lane.b32.xlu1 %v1560_v34, %s1461_s18  ;;  %479 = vrot.lane.b32.xlu0 %v1525_v9, %s1461_s18 }
  0x43   : > { %493 = vrot.lane.b32.xlu1 %v1579_v41, %s1461_s18  ;;  %481 = vrot.lane.b32.xlu0 %v1544_v27, %s1461_s18 }
  0x47   : > { %527 = vrot.lane.b32.xlu1 %v1607_v54, %s1465_s22  ;;  %515 = vrot.lane.b32.xlu0 %v1572_v37, %s1465_s22 }
  0x4b   : > { %529 = vrot.lane.b32.xlu1 %v366_v10, %s1465_s22  ;;  %517 = vrot.lane.b32.xlu0 %v318_v11, %s1465_s22 }
  0x4f   : > { %557 = vrot.lane.b32.xlu1 %v1626_v59, %s1462_s19  ;;  %545 = vrot.lane.b32.xlu0 %v423_v50, %s1462_s19 }
  0x53   : > { %559 = vrot.lane.b32.xlu1 %v437_v14, %s1462_s19  ;;  %547 = vrot.lane.b32.xlu0 %v425_v15, %s1462_s19 }
  0x57   : > { %590 = vrot.lane.b32.xlu1 %v1579_v41, %s1466_s25  ;;  %578 = vrot.lane.b32.xlu0 %v1544_v27, %s1466_s25 }
  0x5b   : > { %592 = vrot.lane.b32.xlu1 %v1632_v60, %s1466_s25  ;;  %580 = vrot.lane.b32.xlu0 %v1635_v61, %s1466_s25 }
  0x5f   : > { %626 = vrot.lane.b32.xlu1 %v366_v10, %s1467_s28  ;;  %614 = vrot.lane.b32.xlu0 %v318_v11, %s1467_s28 }
  0x63   : > { %628 = vrot.lane.b32.xlu1 %v374_v26, %s1467_s28  ;;  %616 = vrot.lane.b32.xlu0 %v326_v29, %s1467_s28 }
  0x67   : > { %656 = vrot.lane.b32.xlu1 %v437_v14, %s1468_s4  ;;  %644 = vrot.lane.b32.xlu0 %v425_v15, %s1468_s4 }
  0x6b   : > { %406 = vrot.lane.b32.xlu1 %v366_v10, %s1464_s21  ;;  %394 = vrot.lane.b32.xlu0 %v318_v11, %s1464_s21 }
  0x6f   : > { %658 = vrot.lane.b32.xlu1 %v439_v32, %s1468_s4  ;;  %646 = vrot.lane.b32.xlu0 %v427_v33, %s1468_s4 }
  0x73   : > { %408 = vrot.lane.b32.xlu1 %v374_v26, %s1464_s21  ;;  %396 = vrot.lane.b32.xlu0 %v326_v29, %s1464_s21 }
  0x77   : > { %462 = vrot.lane.b32.xlu1 %v437_v14, %s1463_s20  ;;  %450 = vrot.lane.b32.xlu0 %v425_v15, %s1463_s20 }
  0x7b   : > { %464 = vrot.lane.b32.xlu1 %v439_v32, %s1463_s20  ;;  %452 = vrot.lane.b32.xlu0 %v427_v33, %s1463_s20 }
  0x7f   : > { %495 = vrot.lane.b32.xlu1 %v1632_v60, %s1461_s18  ;;  %483 = vrot.lane.b32.xlu0 %v1635_v61, %s1461_s18 }
  0x81   : > { %v478_v37 = vpop.permute.xlu1 %477  ;;  %v476_v44 = vpop.permute.xlu0 %475 }
  0x83   : > { %497 = vrot.lane.b32.xlu1 %v1670_v16, %s1461_s18  ;;  %485 = vrot.lane.b32.xlu0 %v1673_v17, %s1461_s18 }
  0x85   : > { %v542_v49 = vpop.permute.xlu0 %541  ;;  %v443_v50 = vpop.permute.xlu1 %442 }
  0x87   : > { %531 = vrot.lane.b32.xlu1 %v374_v26, %s1465_s22  ;;  %519 = vrot.lane.b32.xlu0 %v326_v29, %s1465_s22 }
  0x89   : > { %v445_v56 = vpop.permute.xlu1 %444  ;;  %v387_v58 = vpop.permute.xlu0 %386 }
  0x8a   : > { %v670_v7 = vsel %vm668_vm3, %v1515_v3, %v387_v58 }
  0x8b   : > { %533 = vrot.lane.b32.xlu1 %v1730_v52, %s1465_s22  ;;  %521 = vrot.lane.b32.xlu0 %v1733_v53, %s1465_s22  ;;  %v699_v12 = vsel %vm697_vm4, %v670_v7, %v443_v50  ;;  %v431_v7 = vsel %vm414_vm0, %v428_v63, %v430_v55 }
  0x8c   : > { %v728_v18 = vsel %vm726_vm5, %v699_v12, %v476_v44 }
  0x8d   : > { %v544_v2 = vpop.permute.xlu1 %543  ;;  %v389_v4 = vpop.permute.xlu0 %388 }
  0x8e   : > { %v672_v11 = vsel %vm668_vm3, %v1509_v1, %v389_v4  ;;  %v383_v1 = vshrl.u32 %v1710_v35, 16 }
  0x8f   : > { %561 = vrot.lane.b32.xlu1 %v439_v32, %s1462_s19  ;;  %549 = vrot.lane.b32.xlu0 %v427_v33, %s1462_s19  ;;  %v701_v3 = vsel %vm697_vm4, %v672_v11, %v445_v56  ;;  %v337_v32 = vor.u32 %v335_v21, %v333_v48 }
  0x90   : > { %v730_v22 = vsel %vm726_vm5, %v701_v3, %v478_v37  ;;  %v385_v26 = vor.u32 %v383_v1, %v381_v46 }
  0x91   : > { %v514_v8 = vpop.permute.xlu1 %513  ;;  %v512_v10 = vpop.permute.xlu0 %511  ;;  %v342_v45 = vsel %vm274_vm1, %v337_v32, %v1574_v38  ;;  %v1812_v38 = vrot.slane %v1764_v13, 1 }
  0x92   : > { %v757_v19 = vsel %vm755_vm6, %v728_v18, %v512_v10  ;;  %v759_v29 = vsel %vm755_vm6, %v730_v22, %v514_v8  ;;  %v507_v44 = vsel %vm274_vm1, %v385_v26, %v506_v31 }
  0x93   : > { %563 = vrot.lane.b32.xlu1 %v1747_v5, %s1462_s19  ;;  %551 = vrot.lane.b32.xlu0 %v1752_v6, %s1462_s19  ;;  %v786_v25 = vsel %vm784_vm7, %v757_v19, %v542_v49  ;;  %v788_v42 = vsel %vm784_vm7, %v759_v29, %v544_v2  ;;  %v540_v4 = vsel %vm414_vm0, %v1740_v62, %v1812_v38 }
  0x95   : > { %v577_v14 = vpop.permute.xlu1 %576  ;;  %v575_v15 = vpop.permute.xlu0 %574 }
  0x96   : > { %v815_v30 = vsel %vm813_vm8, %v786_v25, %v575_v15  ;;  %v817_v43 = vsel %vm813_vm8, %v788_v42, %v577_v14 }
  0x97   : > { %594 = vrot.lane.b32.xlu1 %v1670_v16, %s1466_s25  ;;  %582 = vrot.lane.b32.xlu0 %v1673_v17, %s1466_s25 }
  0x99   : > { %v613_v23 = vpop.permute.xlu1 %612  ;;  %v611_v24 = vpop.permute.xlu0 %610 }
  0x9a   : > { %v844_v33 = vsel %vm842_vm9, %v815_v30, %v611_v24  ;;  %v846_v46 = vsel %vm842_vm9, %v817_v43, %v613_v23  ;;  %v1866_v23 = vld [vmem:[%s1503_s17 + $0x78] sm:$0xff]  }
  0x9b   : > { %596 = vrot.lane.b32.xlu1 %v1710_v35, %s1466_s25  ;;  %584 = vrot.lane.b32.xlu0 %v1713_v36, %s1466_s25  ;;  %v603_v32 = vshll.u32 %v1866_v23, 16 }
  0x9d   : > { %v1785_v37 = vpop.permute.xlu1 %390  ;;  %v641_v39 = vpop.permute.xlu0 %640 }
  0x9e   : > { %v873_v40 = vsel %vm871_vm10, %v844_v33, %v641_v39 }
  0x9f   : > { %630 = vrot.lane.b32.xlu1 %v1730_v52, %s1467_s28  ;;  %618 = vrot.lane.b32.xlu0 %v1733_v53, %s1467_s28 }
  0xa0   : > { %1381 = vmatprep.mubr.msk.bf16.mxu0 %vm927_vm11, %v873_v40 }
  0xa1   : > { %v643_v47 = vpop.permute.xlu1 %642  ;;  %v403_v48 = vpop.permute.xlu0 %402 }
  0xa2   : > { %v875_v49 = vsel %vm871_vm10, %v846_v46, %v643_v47  ;;  %v686_v29 = vsel %vm668_vm3, %v1547_v28, %v403_v48  ;;  %v605_v47 = vrot.slane %v603_v32, 1 }
  0xa3   : > { %632 = vrot.lane.b32.xlu1 %v507_v44, %s1467_s28  ;;  %620 = vrot.lane.b32.xlu0 %v342_v45, %s1467_s28 }
  0xa4   : > { %1382 = vmatmul.mubr.msk.bf16.vlgmr.msra.gmra.mxu0 %vm927_vm11, %v875_v49 }
  0xa5   : > { %v1803_v50 = vpop.permute.xlu1 %404  ;;  %v1805_v56 = vpop.permute.xlu0 %392 }
  0xa7   : > { %660 = vrot.lane.b32.xlu1 %v1747_v5, %s1468_s4  ;;  %648 = vrot.lane.b32.xlu0 %v1752_v6, %s1468_s4 }
  0xa9   : > { %v459_v58 = vpop.permute.xlu1 %458  ;;  %v447_v2 = vpop.permute.xlu0 %446 }
  0xaa   : > { %v715_v30 = vsel %vm697_vm4, %v686_v29, %v459_v58 }
  0xab   : > { %410 = vrot.lane.b32.xlu1 %v1730_v52, %s1464_s21  ;;  %398 = vrot.lane.b32.xlu0 %v1733_v53, %s1464_s21 }
  0xad   : > { %v1826_v8 = vpop.permute.xlu1 %460  ;;  %v1828_v10 = vpop.permute.xlu0 %448 }
  0xaf   : > { %662 = vrot.lane.b32.xlu1 %v540_v4, %s1468_s4  ;;  %650 = vrot.lane.b32.xlu0 %v431_v7, %s1468_s4 }
  0xb1   : > { %v492_v52 = vpop.permute.xlu1 %491  ;;  %v480_v53 = vpop.permute.xlu0 %479 }
  0xb2   : > { %v744_v33 = vsel %vm726_vm5, %v715_v30, %v492_v52  ;;  %v607_v52 = vshrl.u32 %v1866_v23, 16 }
  0xb3   : > { %412 = vrot.lane.b32.xlu1 %v385_v26, %s1464_s21  ;;  %400 = vrot.lane.b32.xlu0 %v342_v45, %s1464_s21  ;;  %v674_v26 = vsel %vm668_vm3, %v1506_v0, %v1785_v37 }
  0xb5   : > { %v1834_v11 = vpop.permute.xlu1 %493  ;;  %v1836_v12 = vpop.permute.xlu0 %481 }
  0xb7   : > { %466 = vrot.lane.b32.xlu1 %v1747_v5, %s1463_s20  ;;  %454 = vrot.lane.b32.xlu0 %v1752_v6, %s1463_s20 }
  0xb9   : > { %v528_v55 = vpop.permute.xlu1 %527  ;;  %v516_v63 = vpop.permute.xlu0 %515 }
  0xba   : > { %v773_v40 = vsel %vm755_vm6, %v744_v33, %v528_v55 }
  0xbb   : > { %468 = vrot.lane.b32.xlu1 %v1740_v62, %s1463_s20  ;;  %456 = vrot.lane.b32.xlu0 %v431_v7, %s1463_s20  ;;  %v508_v62 = vshrl.u32 %v1764_v13, 16 }
  0xbd   : > { %v1845_v14 = vpop.permute.xlu1 %529  ;;  %v1847_v15 = vpop.permute.xlu0 %517  ;;  %v510_v1 = vor.u32 %v508_v62, %v506_v31  ;;  %v703_v31 = vsel %vm697_vm4, %v674_v26, %v447_v2 }
  0xbe   : > { %v732_v39 = vsel %vm726_vm5, %v703_v31, %v480_v53 }
  0xbf   : > { %499 = vrot.lane.b32.xlu1 %v1710_v35, %s1461_s18  ;;  %487 = vrot.lane.b32.xlu0 %v1713_v36, %s1461_s18  ;;  %v761_v42 = vsel %vm755_vm6, %v732_v39, %v516_v63 }
  0xc1   : > { %v558_v5 = vpop.permute.xlu1 %557  ;;  %v546_v3 = vpop.permute.xlu0 %545 }
  0xc2   : > { %v802_v43 = vsel %vm784_vm7, %v773_v40, %v558_v5 }
  0xc3   : > { %501 = vrot.lane.b32.xlu1 %v1764_v13, %s1461_s18  ;;  %489 = vrot.lane.b32.xlu0 %v1547_v28, %s1461_s18 }
  0xc5   : > { %v560_v6 = vpop.permute.xlu1 %559  ;;  %v548_v18 = vpop.permute.xlu0 %547 }
  0xc7   : > { %535 = vrot.lane.b32.xlu1 %v507_v44, %s1465_s22  ;;  %523 = vrot.lane.b32.xlu0 %v342_v45, %s1465_s22  ;;  %v790_v44 = vsel %vm784_vm7, %v761_v42, %v546_v3 }
  0xc9   : > { %v591_v19 = vpop.permute.xlu1 %590  ;;  %v579_v20 = vpop.permute.xlu0 %578 }
  0xca   : > { %v831_v45 = vsel %vm813_vm8, %v802_v43, %v591_v19  ;;  %v819_v46 = vsel %vm813_vm8, %v790_v44, %v579_v20 }
  0xcb   : > { %537 = vrot.lane.b32.xlu1 %v510_v1, %s1465_s22  ;;  %525 = vrot.lane.b32.xlu0 %v1601_v51, %s1465_s22 }
  0xcd   : > { %v593_v21 = vpop.permute.xlu1 %592  ;;  %v581_v22 = vpop.permute.xlu0 %580 }
  0xcf   : > { %565 = vrot.lane.b32.xlu1 %v540_v4, %s1462_s19  ;;  %553 = vrot.lane.b32.xlu0 %v431_v7, %s1462_s19 }
  0xd1   : > { %v627_v24 = vpop.permute.xlu1 %626  ;;  %v615_v25 = vpop.permute.xlu0 %614 }
  0xd2   : > { %v860_v48 = vsel %vm842_vm9, %v831_v45, %v627_v24  ;;  %v848_v49 = vsel %vm842_vm9, %v819_v46, %v615_v25 }
  0xd3   : > { %567 = vrot.lane.b32.xlu1 %v1812_v38, %s1462_s19  ;;  %555 = vrot.lane.b32.xlu0 %v1618_v57, %s1462_s19 }
  0xd5   : > { %v629_v0 = vpop.permute.xlu1 %628  ;;  %v617_v37 = vpop.permute.xlu0 %616 }
  0xd7   : > { %598 = vrot.lane.b32.xlu1 %v1764_v13, %s1466_s25  ;;  %586 = vrot.lane.b32.xlu0 %v1547_v28, %s1466_s25  ;;  %v688_v13 = vsel %vm668_vm3, %v1560_v34, %v1803_v50  ;;  %v676_v28 = vsel %vm668_vm3, %v1525_v9, %v1805_v56  ;;  %v606_v9 = vsel %vm274_vm1, %v510_v1, %v605_v47  ;;  %v638_v1 = vrot.slane %v1866_v23, 1 }
  0xd8   : > { %v717_v53 = vsel %vm697_vm4, %v688_v13, %v1826_v8  ;;  %v705_v55 = vsel %vm697_vm4, %v676_v28, %v1828_v10 }
  0xd9   : > { %v657_v58 = vpop.permute.xlu1 %656  ;;  %v645_v2 = vpop.permute.xlu0 %644  ;;  %v746_v50 = vsel %vm726_vm5, %v717_v53, %v1834_v11  ;;  %v609_v11 = vor.u32 %v607_v52, %v605_v47 }
  0xda   : > { %v877_v4 = vsel %vm871_vm10, %v848_v49, %v645_v2  ;;  %v889_v7 = vsel %vm871_vm10, %v860_v48, %v657_v58  ;;  %v775_v8 = vsel %vm755_vm6, %v746_v50, %v1845_v14 }
  0xdb   : > { %600 = vrot.lane.b32.xlu1 %v1866_v23, %s1466_s25  ;;  %588 = vrot.lane.b32.xlu0 %v1560_v34, %s1466_s25  ;;  %v734_v34 = vsel %vm726_vm5, %v705_v55, %v1836_v12  ;;  %v804_v5 = vsel %vm784_vm7, %v775_v8, %v560_v6 }
  0xdc   : > { %1385 = vmatprep.mubr.msk.bf16.mxu0 %vm927_vm11, %v877_v4  ;;  %1397 = vmatprep.mubr.msk.bf16.mxu1 %vm927_vm11, %v889_v7  ;;  %v763_v10 = vsel %vm755_vm6, %v734_v34, %v1847_v15  ;;  %v833_v12 = vsel %vm813_vm8, %v804_v5, %v593_v21 }
  0xdd   : > { %v407_v56 = vpop.permute.xlu1 %406  ;;  %v395_v63 = vpop.permute.xlu0 %394  ;;  %v792_v3 = vsel %vm784_vm7, %v763_v10, %v548_v18  ;;  %v862_v14 = vsel %vm842_vm9, %v833_v12, %v629_v0 }
  0xde   : > { %v821_v62 = vsel %vm813_vm8, %v792_v3, %v581_v22  ;;  %v690_v47 = vsel %vm668_vm3, %v1579_v41, %v407_v56  ;;  %v678_v48 = vsel %vm668_vm3, %v1544_v27, %v395_v63 }
  0xdf   : > { %634 = vrot.lane.b32.xlu1 %v606_v9, %s1467_s28  ;;  %622 = vrot.lane.b32.xlu0 %v1601_v51, %s1467_s28  ;;  %v850_v15 = vsel %vm842_vm9, %v821_v62, %v617_v37  ;;  %v639_v51 = vsel %vm414_vm0, %v1812_v38, %v638_v1 }
  0xe1   : > { %v659_v19 = vpop.permute.xlu1 %658  ;;  %v647_v6 = vpop.permute.xlu0 %646 }
  0xe2   : > { %v891_v18 = vsel %vm871_vm10, %v862_v14, %v659_v19  ;;  %v879_v20 = vsel %vm871_vm10, %v850_v15, %v647_v6 }
  0xe3   : > { %636 = vrot.lane.b32.xlu1 %v609_v11, %s1467_s28  ;;  %624 = vrot.lane.b32.xlu0 %v1607_v54, %s1467_s28 }
  0xe4   : > { %1386 = vmatmul.mubr.msk.bf16.gmra.mxu0 %vm927_vm11, %v879_v20  ;;  %1398 = vmatmul.mubr.msk.bf16.vlgmr.msra.gmra.mxu1 %vm927_vm11, %v891_v18 }
  0xe5   : > { %v409_v21 = vpop.permute.xlu1 %408  ;;  %v397_v22 = vpop.permute.xlu0 %396 }
  0xe6   : > { %v692_v10 = vsel %vm668_vm3, %v1632_v60, %v409_v21  ;;  %v680_v5 = vsel %vm668_vm3, %v1635_v61, %v397_v22 }
  0xe7   : > { %664 = vrot.lane.b32.xlu1 %v639_v51, %s1468_s4  ;;  %652 = vrot.lane.b32.xlu0 %v1618_v57, %s1468_s4 }
  0xe9   : > { %v463_v23 = vpop.permute.xlu1 %462  ;;  %v451_v24 = vpop.permute.xlu0 %450 }
  0xea   : > { %v719_v49 = vsel %vm697_vm4, %v690_v47, %v463_v23  ;;  %v707_v58 = vsel %vm697_vm4, %v678_v48, %v451_v24 }
  0xeb   : > { %666 = vrot.lane.b32.xlu1 %v638_v1, %s1468_s4  ;;  %654 = vrot.lane.b32.xlu0 %v1626_v59, %s1468_s4 }
  0xed   : > { %v465_v54 = vpop.permute.xlu1 %464  ;;  %v453_v25 = vpop.permute.xlu0 %452 }
  0xee   : > { %v721_v3 = vsel %vm697_vm4, %v692_v10, %v465_v54  ;;  %v709_v11 = vsel %vm697_vm4, %v680_v5, %v453_v25 }
  0xf1   : > { %v496_v26 = vpop.permute.xlu1 %495  ;;  %v484_v29 = vpop.permute.xlu0 %483 }
  0xf2   : > { %v748_v2 = vsel %vm726_vm5, %v719_v49, %v496_v26  ;;  %v736_v4 = vsel %vm726_vm5, %v707_v58, %v484_v29 }
  0xf5   : > { %v498_v30 = vpop.permute.xlu1 %497  ;;  %v486_v38 = vpop.permute.xlu0 %485 }
  0xf6   : > { %v750_v12 = vsel %vm726_vm5, %v721_v3, %v498_v30  ;;  %v738_v62 = vsel %vm726_vm5, %v709_v11, %v486_v38 }
  0xf9   : > { %v532_v31 = vpop.permute.xlu1 %531  ;;  %v520_v32 = vpop.permute.xlu0 %519 }
  0xfa   : > { %v777_v28 = vsel %vm755_vm6, %v748_v2, %v532_v31  ;;  %v765_v52 = vsel %vm755_vm6, %v736_v4, %v520_v32 }
  0xfd   : > { %v534_v33 = vpop.permute.xlu1 %533  ;;  %v522_v39 = vpop.permute.xlu0 %521 }
  0xfe   : > { %v779_v15 = vsel %vm755_vm6, %v750_v12, %v534_v33  ;;  %v767_v60 = vsel %vm755_vm6, %v738_v62, %v522_v39 }
 0x101   : > { %v562_v0 = vpop.permute.xlu1 %561  ;;  %v550_v37 = vpop.permute.xlu0 %549 }
 0x102   : > { %v806_v53 = vsel %vm784_vm7, %v777_v28, %v562_v0  ;;  %v794_v41 = vsel %vm784_vm7, %v765_v52, %v550_v37 }
 0x105   : > { %v564_v57 = vpop.permute.xlu1 %563  ;;  %v552_v40 = vpop.permute.xlu0 %551 }
 0x106   : > { %v808_v61 = vsel %vm784_vm7, %v779_v15, %v564_v57  ;;  %v796_v19 = vsel %vm784_vm7, %v767_v60, %v552_v40 }
 0x109   : > { %v595_v42 = vpop.permute.xlu1 %594  ;;  %v583_v43 = vpop.permute.xlu0 %582 }
 0x10a   : > { %v835_v27 = vsel %vm813_vm8, %v806_v53, %v595_v42  ;;  %v823_v55 = vsel %vm813_vm8, %v794_v41, %v583_v43 }
 0x10d   : > { %v597_v44 = vpop.permute.xlu1 %596  ;;  %v585_v45 = vpop.permute.xlu0 %584 }
 0x10e   : > { %v837_v6 = vsel %vm813_vm8, %v808_v61, %v597_v44  ;;  %v825_v18 = vsel %vm813_vm8, %v796_v19, %v585_v45 }
 0x111   : > { %v631_v46 = vpop.permute.xlu1 %630  ;;  %v619_v59 = vpop.permute.xlu0 %618 }
 0x112   : > { %v864_v9 = vsel %vm842_vm9, %v835_v27, %v631_v46  ;;  %v852_v50 = vsel %vm842_vm9, %v823_v55, %v619_v59 }
 0x115   : > { %v633_v7 = vpop.permute.xlu1 %632  ;;  %v621_v13 = vpop.permute.xlu0 %620 }
 0x116   : > { %v866_v20 = vsel %vm842_vm9, %v837_v6, %v633_v7  ;;  %v854_v51 = vsel %vm842_vm9, %v825_v18, %v621_v13 }
 0x119   : > { %v661_v34 = vpop.permute.xlu1 %660  ;;  %v649_v56 = vpop.permute.xlu0 %648 }
 0x11a   : > { %v893_v63 = vsel %vm871_vm10, %v864_v9, %v661_v34  ;;  %v881_v8 = vsel %vm871_vm10, %v852_v50, %v649_v56 }
 0x11b   : > { %1389 = vmatprep.mubr.msk.bf16.mxu0 %vm927_vm11, %v881_v8  ;;  %1401 = vmatprep.mubr.msk.bf16.mxu1 %vm927_vm11, %v893_v63 }
 0x11d   : > { %v411_v1 = vpop.permute.xlu1 %410  ;;  %v399_v14 = vpop.permute.xlu0 %398 }
 0x11e   : > { %v694_v2 = vsel %vm668_vm3, %v1670_v16, %v411_v1  ;;  %v682_v4 = vsel %vm668_vm3, %v1673_v17, %v399_v14 }
 0x121   : > { %v663_v21 = vpop.permute.xlu1 %662  ;;  %v651_v22 = vpop.permute.xlu0 %650 }
 0x122   : > { %v895_v23 = vsel %vm871_vm10, %v866_v20, %v663_v21  ;;  %v883_v24 = vsel %vm871_vm10, %v854_v51, %v651_v22 }
 0x123   : > { %1390 = vmatmul.mubr.msk.bf16.gmra.mxu0 %vm927_vm11, %v883_v24  ;;  %1402 = vmatmul.mubr.msk.bf16.gmra.mxu1 %vm927_vm11, %v895_v23  ;;  %v2030_v23 = vld [vmem:[%s2112_s2] ss:$0 sm:$0xff] }
 0x125   : > { %v413_v54 = vpop.permute.xlu1 %412  ;;  %v401_v25 = vpop.permute.xlu0 %400 }
 0x126   : > { %v696_v16 = vsel %vm668_vm3, %v1710_v35, %v413_v54  ;;  %v684_v17 = vsel %vm668_vm3, %v1713_v36, %v401_v25 }
 0x129   : > { %v467_v26 = vpop.permute.xlu1 %466  ;;  %v455_v29 = vpop.permute.xlu0 %454 }
 0x12a   : > { %v723_v7 = vsel %vm697_vm4, %v694_v2, %v467_v26  ;;  %v711_v13 = vsel %vm697_vm4, %v682_v4, %v455_v29 }
 0x12d   : > { %v469_v30 = vpop.permute.xlu1 %468  ;;  %v457_v38 = vpop.permute.xlu0 %456 }
 0x12e   : > { %v725_v34 = vsel %vm697_vm4, %v696_v16, %v469_v30  ;;  %v713_v56 = vsel %vm697_vm4, %v684_v17, %v457_v38 }
 0x131   : > { %v500_v31 = vpop.permute.xlu1 %499  ;;  %v488_v32 = vpop.permute.xlu0 %487 }
 0x132   : > { %v752_v28 = vsel %vm726_vm5, %v723_v7, %v500_v31  ;;  %v740_v52 = vsel %vm726_vm5, %v711_v13, %v488_v32 }
 0x135   : > { %v502_v33 = vpop.permute.xlu1 %501  ;;  %v490_v39 = vpop.permute.xlu0 %489 }
 0x136   : > { %v754_v10 = vsel %vm726_vm5, %v725_v34, %v502_v33  ;;  %v742_v5 = vsel %vm726_vm5, %v713_v56, %v490_v39 }
 0x139   : > { %v536_v0 = vpop.permute.xlu1 %535  ;;  %v524_v37 = vpop.permute.xlu0 %523 }
 0x13a   : > { %v781_v27 = vsel %vm755_vm6, %v752_v28, %v536_v0  ;;  %v769_v55 = vsel %vm755_vm6, %v740_v52, %v524_v37 }
 0x13d   : > { %v538_v57 = vpop.permute.xlu1 %537  ;;  %v526_v40 = vpop.permute.xlu0 %525 }
 0x13e   : > { %v783_v12 = vsel %vm755_vm6, %v754_v10, %v538_v57  ;;  %v771_v62 = vsel %vm755_vm6, %v742_v5, %v526_v40 }
 0x141   : > { %v566_v42 = vpop.permute.xlu1 %565  ;;  %v554_v43 = vpop.permute.xlu0 %553 }
 0x142   : > { %v810_v9 = vsel %vm784_vm7, %v781_v27, %v566_v42  ;;  %v798_v50 = vsel %vm784_vm7, %v769_v55, %v554_v43 }
 0x145   : > { %v568_v44 = vpop.permute.xlu1 %567  ;;  %v556_v45 = vpop.permute.xlu0 %555 }
 0x146   : > { %v812_v15 = vsel %vm784_vm7, %v783_v12, %v568_v44  ;;  %v800_v60 = vsel %vm784_vm7, %v771_v62, %v556_v45 }
 0x149   : > { %v599_v46 = vpop.permute.xlu1 %598  ;;  %v587_v59 = vpop.permute.xlu0 %586 }
 0x14a   : > { %v839_v63 = vsel %vm813_vm8, %v810_v9, %v599_v46  ;;  %v827_v8 = vsel %vm813_vm8, %v798_v50, %v587_v59 }
 0x14d   : > { %v601_v47 = vpop.permute.xlu1 %600  ;;  %v589_v48 = vpop.permute.xlu0 %588 }
 0x14e   : > { %v841_v61 = vsel %vm813_vm8, %v812_v15, %v601_v47  ;;  %v829_v19 = vsel %vm813_vm8, %v800_v60, %v589_v48 }
 0x151   : > { %v635_v49 = vpop.permute.xlu1 %634  ;;  %v623_v58 = vpop.permute.xlu0 %622 }
 0x152   : > { %v868_v35 = vsel %vm842_vm9, %v839_v63, %v635_v49  ;;  %v856_v36 = vsel %vm842_vm9, %v827_v8, %v623_v58 }
 0x155   : > { %v637_v53 = vpop.permute.xlu1 %636  ;;  %v625_v41 = vpop.permute.xlu0 %624 }
 0x156   : > { %v870_v6 = vsel %vm842_vm9, %v841_v61, %v637_v53  ;;  %v858_v18 = vsel %vm842_vm9, %v829_v19, %v625_v41 }
 0x159   : > { %v665_v3 = vpop.permute.xlu1 %664  ;;  %v653_v11 = vpop.permute.xlu0 %652 }
 0x15a   : > { %v897_v1 = vsel %vm871_vm10, %v868_v35, %v665_v3  ;;  %v885_v14 = vsel %vm871_vm10, %v856_v36, %v653_v11 }
 0x15b   : > { %1393 = vmatprep.mubr.msk.bf16.mxu0 %vm927_vm11, %v885_v14  ;;  %1405 = vmatprep.mubr.msk.bf16.mxu1 %vm927_vm11, %v897_v1 }
 0x15d   : > { %v667_v20 = vpop.permute.xlu1 %666  ;;  %v655_v51 = vpop.permute.xlu0 %654 }
 0x15e   : > { %v899_v21 = vsel %vm871_vm10, %v870_v6, %v667_v20  ;;  %v887_v22 = vsel %vm871_vm10, %v858_v18, %v655_v51 }
 0x15f   : > { %1394 = vmatmul.mubr.msk.bf16.gmra.mxu0 %vm927_vm11, %v887_v22  ;;  %1406 = vmatmul.mubr.msk.bf16.gmra.mxu1 %vm927_vm11, %v899_v21 }
 0x164   : > { %v1383_v24 = vpop.f32.mrf.mxu0 }
 0x165   : > { %v1003_v54 = vadd.f32 %v1383_v24, %v2030_v23 }
 0x166   : > { %v994_v25 = vpop.f32.mrf.mxu0 }
 0x167   : > { %v1107_v26 = vmax.f32 %v1003_v54, 0.0  ;;  %v995_v29 = vadd.f32 %v2030_v23, %v994_v25 }
 0x168   : > { %v1384_v30 = vpop.f32.mrf.mxu0 }
 0x169   : > { %1135 = vst.msk [vmem:[#allocation2 + $0x10] sm:$0xff] %vm697_vm4, %v1107_v26  ;;  %v1105_v38 = vmax.f32 %v995_v29, 0.0  ;;  %v1006_v31 = vadd.f32 %v1384_v30, %v2030_v23 }
 0x16a   : > { %v997_v32 = vpop.f32.mrf.mxu0 }
 0x16b   : > { %1133 = vst.msk [vmem:[#allocation2] sm:$0xff] %vm697_vm4, %v1105_v38  ;;  %v1108_v33 = vmax.f32 %v1006_v31, 0.0  ;;  %v998_v39 = vadd.f32 %v2030_v23, %v997_v32 }
 0x16d   : > { %1136 = vst.msk [vmem:[#allocation2 + $0x18] sm:$0xff] %vm697_vm4, %v1108_v33  ;;  %v1106_v0 = vmax.f32 %v998_v39, 0.0 }
 0x16f   : > { %1134 = vst.msk [vmem:[#allocation2 + $0x8] sm:$0xff] %vm697_vm4, %v1106_v0 }
 0x174   : > { %v1167_v42 = vld [vmem:[#allocation2 + $0x10] ss:$2 sm:$0x7f]  ;;  %v1170_v44 = vld [vmem:[#allocation2 + $0x11] ss:$2 sm:$0x7f] }
 0x176   : > { %v1162_v37 = vld [vmem:[#allocation2] ss:$2 sm:$0x7f]  ;;  %v1164_v57 = vld [vmem:[#allocation2 + $0x1] ss:$2 sm:$0x7f] }
 0x177   : > { %v1165_v40 = vmax.f32 %v1162_v37, %v1164_v57 }
 0x179   : > { %v1168_v43 = vmax.f32 %v1165_v40, %v1167_v42 }
 0x17b   : > { %v1171_v45 = vmax.f32 %v1168_v43, %v1170_v44 }
 0x17d   : > { %1173 = vst.msk [vmem:[%s2044_s10] sm:$0x7f] %vm1172_vm12, %v1171_v45 }
 0x1a4   : > { %v1387_v46 = vpop.f32.mrf.mxu0  ;;  %v1399_v59 = vpop.f32.mrf.mxu1 }
 0x1a5   : > { %v1019_v47 = vadd.f32 %v1387_v46, %v2030_v23  ;;  %v1067_v48 = vadd.f32 %v1399_v59, %v2030_v23 }
 0x1a6   : > { %v1010_v49 = vpop.f32.mrf.mxu0  ;;  %v1058_v58 = vpop.f32.mrf.mxu1 }
 0x1a7   : > { %v1111_v2 = vmax.f32 %v1019_v47, 0.0  ;;  %v1123_v4 = vmax.f32 %v1067_v48, 0.0  ;;  %v1011_v7 = vadd.f32 %v2030_v23, %v1010_v49  ;;  %v1059_v13 = vadd.f32 %v2030_v23, %v1058_v58 }
 0x1a8   : > { %v1388_v28 = vpop.f32.mrf.mxu0  ;;  %v1400_v52 = vpop.f32.mrf.mxu1 }
 0x1a9   : > { %1139 = vst.msk [vmem:[#allocation2 + $0x30] sm:$0xff] %vm697_vm4, %v1111_v2  ;;  %1151 = vst.msk [vmem:[#allocation2 + $0x90] sm:$0xff] %vm697_vm4, %v1123_v4  ;;  %v1109_v53 = vmax.f32 %v1011_v7, 0.0  ;;  %v1121_v41 = vmax.f32 %v1059_v13, 0.0  ;;  %v1022_v27 = vadd.f32 %v1388_v28, %v2030_v23  ;;  %v1070_v55 = vadd.f32 %v1400_v52, %v2030_v23 }
 0x1aa   : > { %v1013_v16 = vpop.f32.mrf.mxu0  ;;  %v1061_v17 = vpop.f32.mrf.mxu1 }
 0x1ab   : > { %1137 = vst.msk [vmem:[#allocation2 + $0x20] sm:$0xff] %vm697_vm4, %v1109_v53  ;;  %1149 = vst.msk [vmem:[#allocation2 + $0x80] sm:$0xff] %vm697_vm4, %v1121_v41  ;;  %v1112_v9 = vmax.f32 %v1022_v27, 0.0  ;;  %v1124_v50 = vmax.f32 %v1070_v55, 0.0  ;;  %v1014_v34 = vadd.f32 %v2030_v23, %v1013_v16  ;;  %v1062_v56 = vadd.f32 %v2030_v23, %v1061_v17 }
 0x1ad   : > { %1140 = vst.msk [vmem:[#allocation2 + $0x38] sm:$0xff] %vm697_vm4, %v1112_v9  ;;  %1152 = vst.msk [vmem:[#allocation2 + $0x98] sm:$0xff] %vm697_vm4, %v1124_v50  ;;  %v1110_v63 = vmax.f32 %v1014_v34, 0.0  ;;  %v1122_v8 = vmax.f32 %v1062_v56, 0.0 }
 0x1af   : > { %1138 = vst.msk [vmem:[#allocation2 + $0x28] sm:$0xff] %vm697_vm4, %v1110_v63  ;;  %1150 = vst.msk [vmem:[#allocation2 + $0x88] sm:$0xff] %vm697_vm4, %v1122_v8 }
 0x1b4   : > { %v1180_v11 = vld [vmem:[#allocation2 + $0x30] ss:$2 sm:$0x7f]  ;;  %v1183_v14 = vld [vmem:[#allocation2 + $0x31] ss:$2 sm:$0x7f] }
 0x1b5   : > { %v1219_v62 = vld [vmem:[#allocation2 + $0x90] ss:$2 sm:$0x7f]  ;;  %v1222_v60 = vld [vmem:[#allocation2 + $0x91] ss:$2 sm:$0x7f] }
 0x1b6   : > { %v1175_v10 = vld [vmem:[#allocation2 + $0x20] ss:$2 sm:$0x7f]  ;;  %v1177_v5 = vld [vmem:[#allocation2 + $0x21] ss:$2 sm:$0x7f] }
 0x1b7   : > { %v1178_v35 = vmax.f32 %v1175_v10, %v1177_v5  ;;  %v1214_v36 = vld [vmem:[#allocation2 + $0x80] ss:$2 sm:$0x7f]  ;;  %v1216_v3 = vld [vmem:[#allocation2 + $0x81] ss:$2 sm:$0x7f] }
 0x1b8   : > { %v1217_v12 = vmax.f32 %v1214_v36, %v1216_v3 }
 0x1b9   : > { %v1181_v1 = vmax.f32 %v1178_v35, %v1180_v11 }
 0x1ba   : > { %v1220_v15 = vmax.f32 %v1217_v12, %v1219_v62 }
 0x1bb   : > { %v1184_v61 = vmax.f32 %v1181_v1, %v1183_v14 }
 0x1bc   : > { %v1223_v19 = vmax.f32 %v1220_v15, %v1222_v60 }
 0x1bd   : > { %1349 = vst.msk [vmem:[%s2044_s10 + $0x8] sm:$0x7f] %vm1172_vm12, %v1184_v61 }
 0x1be   : > { %1352 = vst.msk [vmem:[%s2044_s10 + $0x20] sm:$0x7f] %vm1172_vm12, %v1223_v19 }
 0x1e3   : > { %v1391_v6 = vpop.f32.mrf.mxu0  ;;  %v1403_v18 = vpop.f32.mrf.mxu1 }
 0x1e4   : > { %v1035_v20 = vadd.f32 %v1391_v6, %v2030_v23  ;;  %v1083_v51 = vadd.f32 %v1403_v18, %v2030_v23 }
 0x1e5   : > { %v1026_v21 = vpop.f32.mrf.mxu0  ;;  %v1074_v22 = vpop.f32.mrf.mxu1 }
 0x1e6   : > { %v1115_v24 = vmax.f32 %v1035_v20, 0.0  ;;  %v1127_v54 = vmax.f32 %v1083_v51, 0.0  ;;  %v1027_v25 = vadd.f32 %v2030_v23, %v1026_v21  ;;  %v1075_v26 = vadd.f32 %v2030_v23, %v1074_v22 }
 0x1e7   : > { %v1392_v29 = vpop.f32.mrf.mxu0  ;;  %v1404_v30 = vpop.f32.mrf.mxu1 }
 0x1e8   : > { %1143 = vst.msk [vmem:[#allocation2 + $0x50] sm:$0xff] %vm697_vm4, %v1115_v24  ;;  %1155 = vst.msk [vmem:[#allocation2 + $0xb0] sm:$0xff] %vm697_vm4, %v1127_v54  ;;  %v1113_v38 = vmax.f32 %v1027_v25, 0.0  ;;  %v1125_v31 = vmax.f32 %v1075_v26, 0.0  ;;  %v1038_v32 = vadd.f32 %v1392_v29, %v2030_v23  ;;  %v1086_v33 = vadd.f32 %v1404_v30, %v2030_v23 }
 0x1e9   : > { %v1029_v39 = vpop.f32.mrf.mxu0  ;;  %v1077_v0 = vpop.f32.mrf.mxu1 }
 0x1ea   : > { %1141 = vst.msk [vmem:[#allocation2 + $0x40] sm:$0xff] %vm697_vm4, %v1113_v38  ;;  %1153 = vst.msk [vmem:[#allocation2 + $0xa0] sm:$0xff] %vm697_vm4, %v1125_v31  ;;  %v1116_v37 = vmax.f32 %v1038_v32, 0.0  ;;  %v1128_v57 = vmax.f32 %v1086_v33, 0.0  ;;  %v1030_v40 = vadd.f32 %v2030_v23, %v1029_v39  ;;  %v1078_v42 = vadd.f32 %v2030_v23, %v1077_v0 }
 0x1ec   : > { %1144 = vst.msk [vmem:[#allocation2 + $0x58] sm:$0xff] %vm697_vm4, %v1116_v37  ;;  %1156 = vst.msk [vmem:[#allocation2 + $0xb8] sm:$0xff] %vm697_vm4, %v1128_v57  ;;  %v1114_v43 = vmax.f32 %v1030_v40, 0.0  ;;  %v1126_v44 = vmax.f32 %v1078_v42, 0.0 }
 0x1ee   : > { %1142 = vst.msk [vmem:[#allocation2 + $0x48] sm:$0xff] %vm697_vm4, %v1114_v43  ;;  %1154 = vst.msk [vmem:[#allocation2 + $0xa8] sm:$0xff] %vm697_vm4, %v1126_v44 }
 0x1f3   : > { %v1193_v49 = vld [vmem:[#allocation2 + $0x50] ss:$2 sm:$0x7f]  ;;  %v1196_v7 = vld [vmem:[#allocation2 + $0x51] ss:$2 sm:$0x7f] }
 0x1f4   : > { %v1232_v2 = vld [vmem:[#allocation2 + $0xb0] ss:$2 sm:$0x7f]  ;;  %v1235_v28 = vld [vmem:[#allocation2 + $0xb1] ss:$2 sm:$0x7f] }
 0x1f5   : > { %v1188_v45 = vld [vmem:[#allocation2 + $0x40] ss:$2 sm:$0x7f]  ;;  %v1190_v46 = vld [vmem:[#allocation2 + $0x41] ss:$2 sm:$0x7f] }
 0x1f6   : > { %v1191_v59 = vmax.f32 %v1188_v45, %v1190_v46  ;;  %v1227_v47 = vld [vmem:[#allocation2 + $0xa0] ss:$2 sm:$0x7f]  ;;  %v1229_v48 = vld [vmem:[#allocation2 + $0xa1] ss:$2 sm:$0x7f] }
 0x1f7   : > { %v1230_v58 = vmax.f32 %v1227_v47, %v1229_v48 }
 0x1f8   : > { %v1194_v4 = vmax.f32 %v1191_v59, %v1193_v49 }
 0x1f9   : > { %v1233_v13 = vmax.f32 %v1230_v58, %v1232_v2 }
 0x1fa   : > { %v1197_v52 = vmax.f32 %v1194_v4, %v1196_v7 }
 0x1fb   : > { %v1236_v53 = vmax.f32 %v1233_v13, %v1235_v28 }
 0x1fc   : > { %1350 = vst.msk [vmem:[%s2044_s10 + $0x10] sm:$0x7f] %vm1172_vm12, %v1197_v52 }
 0x1fd   : > { %1353 = vst.msk [vmem:[%s2044_s10 + $0x28] sm:$0x7f] %vm1172_vm12, %v1236_v53 }
 0x21f   : > { %v1395_v41 = vpop.f32.mrf.mxu0  ;;  %v1407_v27 = vpop.f32.mrf.mxu1 }
 0x220   : > { %v1051_v55 = vadd.f32 %v1395_v41, %v2030_v23  ;;  %v1099_v16 = vadd.f32 %v1407_v27, %v2030_v23 }
 0x221   : > { %v1042_v17 = vpop.f32.mrf.mxu0  ;;  %v1090_v9 = vpop.f32.mrf.mxu1 }
 0x222   : > { %v1119_v50 = vmax.f32 %v1051_v55, 0.0  ;;  %v1131_v34 = vmax.f32 %v1099_v16, 0.0  ;;  %v1043_v56 = vadd.f32 %v2030_v23, %v1042_v17  ;;  %v1091_v63 = vadd.f32 %v2030_v23, %v1090_v9 }
 0x223   : > { %v1396_v8 = vpop.f32.mrf.mxu0  ;;  %v1408_v10 = vpop.f32.mrf.mxu1 }
 0x224   : > { %1147 = vst.msk [vmem:[#allocation2 + $0x70] sm:$0xff] %vm697_vm4, %v1119_v50  ;;  %1159 = vst.msk [vmem:[#allocation2 + $0xd0] sm:$0xff] %vm697_vm4, %v1131_v34  ;;  %v1117_v5 = vmax.f32 %v1043_v56, 0.0  ;;  %v1129_v35 = vmax.f32 %v1091_v63, 0.0  ;;  %v1054_v36 = vadd.f32 %v1396_v8, %v2030_v23  ;;  %v1102_v3 = vadd.f32 %v1408_v10, %v2030_v23 }
 0x225   : > { %v1045_v11 = vpop.f32.mrf.mxu0  ;;  %v1093_v12 = vpop.f32.mrf.mxu1 }
 0x226   : > { %1145 = vst.msk [vmem:[#allocation2 + $0x60] sm:$0xff] %vm697_vm4, %v1117_v5  ;;  %1157 = vst.msk [vmem:[#allocation2 + $0xc0] sm:$0xff] %vm697_vm4, %v1129_v35  ;;  %v1120_v62 = vmax.f32 %v1054_v36, 0.0  ;;  %v1132_v1 = vmax.f32 %v1102_v3, 0.0  ;;  %v1046_v14 = vadd.f32 %v2030_v23, %v1045_v11  ;;  %v1094_v15 = vadd.f32 %v2030_v23, %v1093_v12 }
 0x228   : > { %1148 = vst.msk [vmem:[#allocation2 + $0x78] sm:$0xff] %vm697_vm4, %v1120_v62  ;;  %v1118_v60 = vmax.f32 %v1046_v14, 0.0  ;;  %v1130_v61 = vmax.f32 %v1094_v15, 0.0 }
 0x229   : > { %1161 = vst.msk [vmem:[#allocation2 + $0xd8] sm:$0x3f] %vm1160_vm13, %v1132_v1 }
 0x22a   : > { %1146 = vst.msk [vmem:[#allocation2 + $0x68] sm:$0xff] %vm697_vm4, %v1118_v60  ;;  %1158 = vst.msk [vmem:[#allocation2 + $0xc8] sm:$0xff] %vm697_vm4, %v1130_v61 }
 0x22f   : > { %v1206_v21 = vld [vmem:[#allocation2 + $0x70] ss:$2 sm:$0x7f]  ;;  %v1209_v54 = vld [vmem:[#allocation2 + $0x71] ss:$2 sm:$0x7f] }
 0x230   : > { %v1245_v24 = vld [vmem:[#allocation2 + $0xd0] ss:$2 sm:$0x7f]  ;;  %v1248_v26 = vld [vmem:[#allocation2 + $0xd1] ss:$2 sm:$0x7f] }
 0x231   : > { %v1201_v19 = vld [vmem:[#allocation2 + $0x60] ss:$2 sm:$0x7f]  ;;  %v1203_v6 = vld [vmem:[#allocation2 + $0x61] ss:$2 sm:$0x7f] }
 0x232   : > { %v1204_v18 = vmax.f32 %v1201_v19, %v1203_v6  ;;  %v1240_v20 = vld [vmem:[#allocation2 + $0xc0] ss:$2 sm:$0x7f]  ;;  %v1242_v51 = vld [vmem:[#allocation2 + $0xc1] ss:$2 sm:$0x7f] }
 0x233   : > { %v1243_v22 = vmax.f32 %v1240_v20, %v1242_v51 }
 0x234   : > { %v1207_v23 = vmax.f32 %v1204_v18, %v1206_v21 }
 0x235   : > { %v1246_v25 = vmax.f32 %v1243_v22, %v1245_v24 }
 0x236   : > { %v1210_v29 = vmax.f32 %v1207_v23, %v1209_v54 }
 0x237   : > { %v1249_v30 = vmax.f32 %v1246_v25, %v1248_v26 }
 0x238   : > { %1351 = vst.msk [vmem:[%s2044_s10 + $0x18] sm:$0x7f] %vm1172_vm12, %v1210_v29 }
 0x239   : > { %1354 = vst.msk [vmem:[%s2044_s10 + $0x30] sm:$0x7f] %vm1172_vm12, %v1249_v30 }
 0x23a PF: > { %s13_s12 = sadd.s32 1, %s1459_s12  }
 0x23b   : > { %p10_p4 = scmp.ge.s32.totalorder %s13_s12, 4  }
 0x23d   :  { %12 = sbr.rel (!%p10_p4) target bundleno = 1 (0x1), region = 95 }

</bundles_post_ra>
